<compile_context>
chip_gen: v7x
topology: tpu7x:2x2x1
jax: 0.10.0
libtpu: 0.0.40
codegen_flags: <defaults>
</compile_context>

<pallas_src>
import functools

import jax
import jax.numpy as jnp
from jax import lax
from jax.experimental import pallas as pl
from jax.experimental.pallas import tpu as pltpu

LANE = 128
CHUNK = 512  # inner sub-tile: h1 (16,512)f32 = 32 KiB + h2 (8,512)f32 = 16 KiB stay in vregs


def _round_up(n, m):
    return ((n + m - 1) // m) * m


def titanic_mlp_kernel(x_ref, w1_ref, b1_ref, w2_ref, b2_ref, w3_ref, b3_ref,
                       o_ref, *, chunk):
    # x_ref: (8, TB) bf16 feature-major tile (row 7 is zero padding).
    tb = x_ref.shape[1]
    n_chunks = tb // chunk

    # Hoist weight loads and lane-broadcast biases out of the chunk loop
    # (JAX does not CSE broadcast_in_dim inside loops).
    w1 = w1_ref[...]                                    # (16, 8)  bf16
    w2 = w2_ref[...]                                    # (8, 16)  bf16
    b1 = jnp.broadcast_to(b1_ref[...], (16, chunk))     # f32
    b2 = jnp.broadcast_to(b2_ref[...], (8, chunk))      # f32
    w3 = jnp.broadcast_to(w3_ref[...], (8, chunk))      # f32
    b3 = jnp.broadcast_to(b3_ref[...], (1, chunk))      # f32

    def body(c, carry):
        col = pl.multiple_of(c * chunk, chunk)
        x = x_ref[:, pl.ds(col, chunk)]                 # (8, chunk) bf16

        # Layer 1: (16,8)@(8,chunk) on the MXU, f32 accumulate; bias+ReLU on VPU.
        h1 = jnp.dot(w1, x, preferred_element_type=jnp.float32) + b1
        h1 = jnp.maximum(h1, 0.0)

        # Layer 2: (8,16)@(16,chunk) on the MXU (bf16 operands, f32 accumulate).
        h2 = jnp.dot(w2, h1.astype(jnp.bfloat16),
                     preferred_element_type=jnp.float32) + b2
        h2 = jnp.maximum(h2, 0.0)

        # Head (8 -> 1): VPU broadcast-multiply + sublane (XLU) reduce; an MXU
        # push/pop for 8 MACs per column is not worth it.
        z = jnp.sum(w3 * h2, axis=0, keepdims=True) + b3      # (1, chunk) f32

        # Sigmoid with the divide on the (otherwise idle) EUP slot.
        prob = pl.reciprocal(1.0 + jnp.exp(-z), approx=True)
        o_ref[:, pl.ds(col, chunk)] = prob.astype(o_ref.dtype)
        return carry

    lax.fori_loop(0, n_chunks, body, 0, unroll=n_chunks <= 4)


def _choose_tiles(batch, target_tb):
    """Pick (TB, chunk, padded_batch): lane tile, inner sub-tile, padded lanes."""
    b128 = _round_up(max(batch, 1), LANE)
    chunk = min(CHUNK, b128)                       # multiple of 128 by construction
    n_chunks = pl.cdiv(b128, chunk)
    max_chunks_per_step = max(1, target_tb // chunk)
    # >= 2 grid steps whenever the batch allows, so both v7x TensorCores get
    # sharded work; chunks split near-evenly -> padding waste < `steps` chunks.
    steps = max(pl.cdiv(n_chunks, max_chunks_per_step), 2 if n_chunks > 1 else 1)
    chunks_per_step = pl.cdiv(n_chunks, steps)
    tb = chunks_per_step * chunk
    grid = pl.cdiv(n_chunks, chunks_per_step)
    return tb, chunk, grid * tb


def titanic_forward_feature_major(x_fm, params, *, max_batch_tile=32768):
    """Preferred entry point: x_fm is (8, B) feature-major (rows 0..6 = features,
    row 7 = zeros), ideally already bf16 with B a multiple of 128 so no extra
    HBM pass happens here.  Returns lane-dense (1, B) f32 probabilities."""
    w1, b1, w2, b2, w3, b3 = params
    batch = x_fm.shape[1]
    tb, chunk, b_pad = _choose_tiles(batch, max_batch_tile)
    if b_pad != batch:
        x_fm = jnp.pad(x_fm, ((0, 0), (0, b_pad - batch)))
    x_fm = x_fm.astype(jnp.bfloat16)

    grid = (b_pad // tb,)
    const = lambda i: (0, 0)  # weights/biases stay VMEM-resident across steps

    out = pl.pallas_call(
        functools.partial(titanic_mlp_kernel, chunk=chunk),
        out_shape=jax.ShapeDtypeStruct((1, b_pad), jnp.float32),
        grid=grid,
        in_specs=[
            pl.BlockSpec((8, tb), lambda i: (0, i)),   # x tile (lane-dense)
            pl.BlockSpec((16, 8), const),              # w1 (bf16, K padded 7->8)
            pl.BlockSpec((16, 1), const),              # b1 (f32)
            pl.BlockSpec((8, 16), const),              # w2 (bf16)
            pl.BlockSpec((8, 1), const),               # b2 (f32)
            pl.BlockSpec((8, 1), const),               # w3 (transposed head, f32)
            pl.BlockSpec((1, 1), const),               # b3 (f32)
        ],
        out_specs=pl.BlockSpec((1, tb), lambda i: (0, i)),
        compiler_params=pltpu.CompilerParams(
            dimension_semantics=("parallel",)),
    )(x_fm, w1, b1, w2, b2, w3, b3)

    return out[:, :batch]


def titanic_forward(x, params, *, max_batch_tile=32768):
    """PyTorch-parity wrapper: x (B, 7) f32 -> (B, 1) f32.

    The (B,7)->(8,B) flip + bf16 cast below is the extra HBM pass the perf
    review flags; producers should emit feature-major bf16 and call
    titanic_forward_feature_major directly."""
    x_fm = jnp.pad(x.astype(jnp.float32), ((0, 0), (0, 1))).T
    out = titanic_forward_feature_major(x_fm, params,
                                        max_batch_tile=max_batch_tile)
    return out.T  # (B, 1)


def init_params(key):
    """PyTorch-style U(+/-1/sqrt(fan_in)) init in kernel-ready layouts/dtypes.

    w1: (16, 8) bf16 (zero-padded 8th input column; true fan_in is 7)
    b1: (16, 1) f32     w2: (8, 16) bf16     b2: (8, 1) f32
    w3: (8, 1) f32 (transposed head weight)  b3: (1, 1) f32
    """
    def linear_init(key, fan_in, fan_out):
        kw, kb = jax.random.split(key)
        bound = 1.0 / jnp.sqrt(fan_in)
        w = jax.random.uniform(kw, (fan_out, fan_in), jnp.float32, -bound, bound)
        b = jax.random.uniform(kb, (fan_out, 1), jnp.float32, -bound, bound)
        return w, b

    k1, k2, k3 = jax.random.split(key, 3)
    w1, b1 = linear_init(k1, 7, 16)    # (16, 7)
    w2, b2 = linear_init(k2, 16, 8)    # (8, 16)
    w3, b3 = linear_init(k3, 8, 1)     # (1, 8)

    w1 = jnp.pad(w1, ((0, 0), (0, 1))).astype(jnp.bfloat16)   # (16, 8), K padded
    w2 = w2.astype(jnp.bfloat16)
    w3 = w3.T                                                  # (8, 1) f32
    return w1, b1, w2, b2, w3, b3


def reference_forward(x, params):
    """Pure-JAX f32 reference with PyTorch semantics (x: (B,7) -> (B,1))."""
    w1, b1, w2, b2, w3, b3 = params
    w1 = w1.astype(jnp.float32)
    w2 = w2.astype(jnp.float32)
    xp = jnp.pad(x, ((0, 0), (0, 1)))                  # (B, 8)
    h1 = jnp.maximum(xp @ w1.T + b1.T, 0.0)            # (B, 16)
    h2 = jnp.maximum(h1 @ w2.T + b2.T, 0.0)            # (B, 8)
    return jax.nn.sigmoid(h2 @ w3 + b3.T)              # (B, 1)


if __name__ == "__main__":
    key = jax.random.PRNGKey(0)
    kp, kx1, kx2 = jax.random.split(key, 3)
    params = init_params(kp)

    # Small batch: single 128-lane tile, single grid step (compat wrapper path).
    batch = 16
    x = jax.random.normal(kx1, (batch, 7), dtype=jnp.float32)
    out = jax.block_until_ready(titanic_forward(x, params))
    ref = reference_forward(x, params)
    assert out.shape == (batch, 1)
    assert jnp.allclose(out, ref, atol=2e-2), float(jnp.max(jnp.abs(out - ref)))

    # Ragged batch via the preferred feature-major entry point: exercises a
    # 2-step parallel grid (v7x megacore), the in-kernel chunk loop and tail
    # padding (TB=1024, chunk=512, grid=(2,)).
    batch2 = 1200
    x2 = jax.random.normal(kx2, (batch2, 7), dtype=jnp.float32)
    x2_fm = jnp.pad(x2, ((0, 0), (0, 1))).T            # (8, 1200) producer-side layout
    out2 = jax.block_until_ready(
        titanic_forward_feature_major(x2_fm, params, max_batch_tile=1024))
    ref2 = reference_forward(x2, params)
    assert out2.shape == (1, batch2)
    assert jnp.allclose(out2.T, ref2, atol=2e-2), \
        float(jnp.max(jnp.abs(out2.T - ref2)))

    print("KERNEL_OK")
</pallas_src>

<mosaic_0001>
module attributes {stable_mosaic.version = 11 : i64} {
  func.func @titanic_mlp_kernel(%arg0: i32, %arg1: memref<8x128xbf16, #tpu.memory_space<vmem>>, %arg2: memref<16x8xbf16, #tpu.memory_space<vmem>>, %arg3: memref<16x1xf32, #tpu.memory_space<vmem>>, %arg4: memref<8x16xbf16, #tpu.memory_space<vmem>>, %arg5: memref<8x1xf32, #tpu.memory_space<vmem>>, %arg6: memref<8x1xf32, #tpu.memory_space<vmem>>, %arg7: memref<1x1xf32, #tpu.memory_space<vmem>>, %arg8: memref<1x128xf32, #tpu.memory_space<vmem>>) attributes {dimension_semantics = [#tpu.dimension_semantics<parallel>], iteration_bounds = array<i64: 1>, scalar_prefetch = 0 : i64, scratch_operands = 0 : i64, tpu.core_type = #tpu.core_type<tc>, window_params = [{transform_indices = @transform_0, window_bounds = array<i64: 8, 128>}, {pipeline_mode = #tpu.pipeline_mode<synchronous>, transform_indices = @transform_1, window_bounds = array<i64: 16, 8>}, {pipeline_mode = #tpu.pipeline_mode<synchronous>, transform_indices = @transform_2, window_bounds = array<i64: 16, 1>}, {pipeline_mode = #tpu.pipeline_mode<synchronous>, transform_indices = @transform_3, window_bounds = array<i64: 8, 16>}, {pipeline_mode = #tpu.pipeline_mode<synchronous>, transform_indices = @transform_4, window_bounds = array<i64: 8, 1>}, {pipeline_mode = #tpu.pipeline_mode<synchronous>, transform_indices = @transform_5, window_bounds = array<i64: 8, 1>}, {pipeline_mode = #tpu.pipeline_mode<synchronous>, transform_indices = @transform_6, window_bounds = array<i64: 1, 1>}, {transform_indices = @transform_7, window_bounds = array<i64: 1, 128>}]} {
    %c0 = arith.constant 0 : index
    %c0_0 = arith.constant 0 : index
    %0 = vector.load %arg2[%c0, %c0_0] : memref<16x8xbf16, #tpu.memory_space<vmem>>, vector<16x8xbf16>
    %c0_1 = arith.constant 0 : index
    %c0_2 = arith.constant 0 : index
    %1 = vector.load %arg4[%c0_1, %c0_2] : memref<8x16xbf16, #tpu.memory_space<vmem>>, vector<8x16xbf16>
    %c0_3 = arith.constant 0 : index
    %c0_4 = arith.constant 0 : index
    %2 = vector.load %arg3[%c0_3, %c0_4] : memref<16x1xf32, #tpu.memory_space<vmem>>, vector<16x1xf32>
    %3 = vector.shape_cast %2 : vector<16x1xf32> to vector<16x1xf32>
    %4 = vector.broadcast %3 : vector<16x1xf32> to vector<16x128xf32>
    %c0_5 = arith.constant 0 : index
    %c0_6 = arith.constant 0 : index
    %5 = vector.load %arg5[%c0_5, %c0_6] : memref<8x1xf32, #tpu.memory_space<vmem>>, vector<8x1xf32>
    %6 = vector.shape_cast %5 : vector<8x1xf32> to vector<8x1xf32>
    %7 = vector.broadcast %6 : vector<8x1xf32> to vector<8x128xf32>
    %c0_7 = arith.constant 0 : index
    %c0_8 = arith.constant 0 : index
    %8 = vector.load %arg6[%c0_7, %c0_8] : memref<8x1xf32, #tpu.memory_space<vmem>>, vector<8x1xf32>
    %9 = vector.shape_cast %8 : vector<8x1xf32> to vector<8x1xf32>
    %10 = vector.broadcast %9 : vector<8x1xf32> to vector<8x128xf32>
    %c0_9 = arith.constant 0 : index
    %c0_10 = arith.constant 0 : index
    %11 = vector.load %arg7[%c0_9, %c0_10] : memref<1x1xf32, #tpu.memory_space<vmem>>, vector<1x1xf32>
    %12 = vector.shape_cast %11 : vector<1x1xf32> to vector<1x1xf32>
    %13 = vector.broadcast %12 : vector<1x1xf32> to vector<1x128xf32>
    %c0_i32 = arith.constant 0 : i32
    %c128_i32 = arith.constant 128 : i32
    %14 = arith.muli %c0_i32, %c128_i32 : i32
    %15 = tpu.assume_multiple %14, 128 : i32
    %c0_11 = arith.constant 0 : index
    %16 = arith.index_cast %15 : i32 to index
    %17 = vector.load %arg1[%c0_11, %16] : memref<8x128xbf16, #tpu.memory_space<vmem>>, vector<8x128xbf16>
    %cst = arith.constant dense<0.000000e+00> : vector<16x128xf32>
    %18 = tpu.matmul %0, %17, %cst {dimension_numbers = #tpu.dot_dimension_numbers<[1], [0], [0], [1], [0, 0, 1, 1], [], []>} : vector<16x8xbf16>, vector<8x128xbf16>, vector<16x128xf32> -> vector<16x128xf32>
    %19 = arith.addf %18, %4 : vector<16x128xf32>
    %cst_12 = arith.constant 0.000000e+00 : f32
    %20 = vector.broadcast %cst_12 : f32 to vector<16x128xf32>
    %21 = arith.maximumf %19, %20 : vector<16x128xf32>
    %22 = arith.truncf %21 : vector<16x128xf32> to vector<16x128xbf16>
    %cst_13 = arith.constant dense<0.000000e+00> : vector<8x128xf32>
    %23 = tpu.matmul %1, %22, %cst_13 {dimension_numbers = #tpu.dot_dimension_numbers<[1], [0], [0], [1], [0, 0, 1, 1], [], []>} : vector<8x16xbf16>, vector<16x128xbf16>, vector<8x128xf32> -> vector<8x128xf32>
    %24 = arith.addf %23, %7 : vector<8x128xf32>
    %cst_14 = arith.constant 0.000000e+00 : f32
    %25 = vector.broadcast %cst_14 : f32 to vector<8x128xf32>
    %26 = arith.maximumf %24, %25 : vector<8x128xf32>
    %27 = arith.mulf %10, %26 : vector<8x128xf32>
    %cst_15 = arith.constant dense<0.000000e+00> : vector<128xf32>
    %28 = vector.multi_reduction <add>, %27, %cst_15 [0] : vector<8x128xf32> to vector<128xf32>
    %29 = vector.shape_cast %28 : vector<128xf32> to vector<1x128xf32>
    %30 = arith.addf %29, %13 : vector<1x128xf32>
    %cst_16 = arith.constant 0.000000e+00 : f32
    %31 = vector.broadcast %cst_16 : f32 to vector<1x128xf32>
    %32 = arith.subf %31, %30 : vector<1x128xf32>
    %33 = math.exp %32 : vector<1x128xf32>
    %cst_17 = arith.constant 1.000000e+00 : f32
    %34 = vector.broadcast %cst_17 : f32 to vector<1x128xf32>
    %35 = arith.addf %34, %33 : vector<1x128xf32>
    %36 = tpu.reciprocal %35 {approx = true} : vector<1x128xf32> -> vector<1x128xf32>
    %c0_18 = arith.constant 0 : index
    %37 = arith.index_cast %15 : i32 to index
    %38 = vector.load %arg8[%c0_18, %37] : memref<1x128xf32, #tpu.memory_space<vmem>>, vector<1x128xf32>
    tpu.vector_store %arg8[%c0_18, %37], %36 {strides = array<i32>} : memref<1x128xf32, #tpu.memory_space<vmem>>, vector<1x128xf32>,
    %c1_i32 = arith.constant 1 : i32
    return
  }
  func.func @transform_0(%arg0: i32) -> (i32, i32) {
    %c0_i32 = arith.constant 0 : i32
    %c0_i32_0 = arith.constant 0 : i32
    return %c0_i32, %arg0 : i32, i32
  }
  func.func @transform_1(%arg0: i32) -> (i32, i32) {
    %c0_i32 = arith.constant 0 : i32
    %c0_i32_0 = arith.constant 0 : i32
    %c0_i32_1 = arith.constant 0 : i32
    return %c0_i32, %c0_i32_0 : i32, i32
  }
  func.func @transform_2(%arg0: i32) -> (i32, i32) {
    %c0_i32 = arith.constant 0 : i32
    %c0_i32_0 = arith.constant 0 : i32
    %c0_i32_1 = arith.constant 0 : i32
    return %c0_i32, %c0_i32_0 : i32, i32
  }
  func.func @transform_3(%arg0: i32) -> (i32, i32) {
    %c0_i32 = arith.constant 0 : i32
    %c0_i32_0 = arith.constant 0 : i32
    %c0_i32_1 = arith.constant 0 : i32
    return %c0_i32, %c0_i32_0 : i32, i32
  }
  func.func @transform_4(%arg0: i32) -> (i32, i32) {
    %c0_i32 = arith.constant 0 : i32
    %c0_i32_0 = arith.constant 0 : i32
    %c0_i32_1 = arith.constant 0 : i32
    return %c0_i32, %c0_i32_0 : i32, i32
  }
  func.func @transform_5(%arg0: i32) -> (i32, i32) {
    %c0_i32 = arith.constant 0 : i32
    %c0_i32_0 = arith.constant 0 : i32
    %c0_i32_1 = arith.constant 0 : i32
    return %c0_i32, %c0_i32_0 : i32, i32
  }
  func.func @transform_6(%arg0: i32) -> (i32, i32) {
    %c0_i32 = arith.constant 0 : i32
    %c0_i32_0 = arith.constant 0 : i32
    %c0_i32_1 = arith.constant 0 : i32
    return %c0_i32, %c0_i32_0 : i32, i32
  }
  func.func @transform_7(%arg0: i32) -> (i32, i32) {
    %c0_i32 = arith.constant 0 : i32
    %c0_i32_0 = arith.constant 0 : i32
    return %c0_i32, %arg0 : i32, i32
  }
}

</mosaic_0001>

<bundles_post_ra>
// kernel: tpu_custom_call.1
= control target key start
LH: loop header
LB: loop body
LE: loop exit
PB: predicated region body
PF: predicated region fallthrough
CT: control target
= control target key end

     0   :  { %s332_s0 = inlined_call_operand.vmem [shape: bf16[8,128], index: 0, kind: input, shape index: {}]   ;;  %s333_s1 = inlined_call_operand.vmem [shape: bf16[16,8], index: 1, kind: input, shape index: {}]   ;;  %s334_s2 = inlined_call_operand.vmem [shape: f32[16,1], index: 2, kind: input, shape index: {}]   ;;  %s335_s3 = inlined_call_operand.vmem [shape: bf16[8,16], index: 3, kind: input, shape index: {}]   ;;  %s336_s4 = inlined_call_operand.vmem [shape: f32[8,1], index: 4, kind: input, shape index: {}]   ;;  %s337_s5 = inlined_call_operand.vmem [shape: f32[8,1], index: 5, kind: input, shape index: {}]   ;;  %s338_s6 = inlined_call_operand.<no memory space> [shape: f32[1,1], index: 6, kind: input, shape index: {}]   ;;  %s339_s7 = inlined_call_operand.hbm [shape: f32[1,128], index: 7, kind: output, shape index: {}]  }
   0x1   :  { %v12_v0 = vstv %s338_s6 }
   0x2   :  { %13 = vst [vmem:[#allocation2] sm:$0x1] %v12_v0 }
   0x3   :  { %v67_v1 = vld [vmem:[%s332_s0] sm:$0xf]  ;;  %vm77_vm0 = vcmask 1043456   ;;  %v252_v2 = vmov 0.0   ;;  %vm253_vm1 = vmmov 0   ;;  %vm73_vm2 = vcmask 64512  }
   0x4   :  { %205 = vmatprep.subr.bf16.mxu0 %v252_v2  ;;  %v79_v3 = vsel %vm77_vm0, %v67_v1, 0  ;;  %207 = vmatprep.mubr.msk.bf16.mxu0 %vm253_vm1, %v252_v2  ;;  %v223_v4 = vld [vmem:[%s333_s1] sm:$0xff]   ;;  %v254_v6 = vmov 0  }
   0x5   :  { %206 = vmatpush3.bf16.msra.mxu0 %v79_v3  ;;  %v33_v5 = vld [vmem:[%s334_s2] sm:$0xff]  ;;  %211 = vmatprep.subr.bf16.mxu1 %v252_v2 }
   0x6   :  { %221 = vset.pattern.permute.xlu0 %v254_v6  ;;  %213 = vmatprep.mubr.msk.bf16.mxu1 %vm253_vm1, %v252_v2 }
   0x7   :  { %14 = vsyncpa [#allocation4], 0  ;;  %37 = vperm.xlu0 %221, %v33_v5   ;;  %222 = vset.pattern.permute.xlu1 %v254_v6  ;;  %v34_v7 = vld [vmem:[%s334_s2 + $0x8] sm:$0xff]  ;;  %v45_v9 = vld [vmem:[%s336_s4] sm:$0xff]  ;;  %vm125_vm3 = vcmask 130048   ;;  %v63_v31 = vlaneseq }
   0x8   :  { %208 = vmatmul.mubr.msk.bf16.vlgmr.msra.gmra.mrb[0].mxu0 %vm73_vm2, %v223_v4  ;;  %48 = vperm.xlu1 %222, %v45_v9   ;;  %v51_v10 = vld [vmem:[%s337_s5] sm:$0xff] }
   0x9   :  { %v57_v8 = vld [vmem:[#allocation2] sm:$0x1]  ;;  %v64_v34 = vshrl.u32 %v63_v31, 7 }
   0xa   :  { %v32_v22 = vld [vmem:[%s335_s3] sm:$0xf]  ;;  %s255_s3 = smov [#allocation3]  }
   0xb   :  { %42 = vperm.xlu0 %221, %v34_v7   ;;  %v65_v37 = vsub.s32 0, %v64_v34  ;;  %s190_s5 = sshll.u32 %s255_s3, 4  ;;  %s191_s5 = int_to_ptr.vmem [resolvable:$true] %s190_s5 }
   0xc   :  { %54 = vperm.xlu1 %222, %v51_v10   ;;  %s228_s12 = scalar_lea.vmem %s191_s5, 16  ;;  %s232_s13 = scalar_lea.vmem %s191_s5, 32 }
   0xd   :  { %p229_p0 = scmp.ne.s32.totalorder %s191_s5, %s228_s12  ;;  %p233_p1 = scmp.lt.s32.totalorder %s191_s5, %s191_s5 }
   0xe   :  { %p234_p2 = scmp.lt.s32.totalorder %s232_s13, %s228_s12 }
   0xf   :  { %60 = vperm.xlu0 %221, %v57_v8  }
  0x10   :  { %p235_p3 = por %p234_p2, %p233_p1 }
  0x12   :  { %p236_p4 = pnand %p235_p3, %p229_p0 }
  0x86   :  { %v38_v11 = vpop.permute.xlu0 %37 }
  0x87   :  { %v49_v23 = vpop.permute.xlu1 %48 }
  0x8a   :  { %v43_v15 = vpop.permute.xlu0 %42 }
  0x8b   :  { %v55_v30 = vpop.permute.xlu1 %54 }
  0x8e   :  { %v61_v39 = vpop.permute.xlu0 %60 }
  0x8f   :  { %v66_v41 = vrot.slane %v61_v39, %v65_v37 }
  0xdb   :  { %v115_v12 = vpop.f32.mrb[0].mxu0 }
  0xdc   :  { %v116_v13 = vadd.f32 %v115_v12, %v38_v11  ;;  %v209_v14 = vpop.f32.mrb[1].mxu0 }
  0xdd   :  { %v118_v16 = vpop.f32.mrb[2].mxu0 }
  0xde   :  { %v119_v17 = vadd.f32 %v118_v16, %v43_v15  ;;  %v210_v18 = vpop.f32.mrb[3].mxu0  ;;  %v122_v19 = vmax.f32 %v116_v13, 0.0 }
  0xe0   :  { %v123_v20 = vmax.f32 %v119_v17, 0.0 }
  0xe2   :  { %v124_v21 = vpack.c.bf16 %v123_v20, %v122_v19 }
  0xe4   :  { %212 = vmatpush3.bf16.msra.mxu1 %v124_v21 }
  0xe7   :  { %214 = vmatmul.mubr.msk.bf16.vlgmr.msra.gmra.mrb[0].mxu1 %vm125_vm3, %v32_v22 }
 0x1ba   :  { %v163_v24 = vpop.f32.mrb[0].mxu1 }
 0x1bb   :  { %v164_v25 = vadd.f32 %v163_v24, %v49_v23  ;;  %v215_v26 = vpop.f32.mrb[1].mxu1 }
 0x1bc   :  { %v166_v27 = vpop.f32.mrb[2].mxu1 }
 0x1bd   :  { %v169_v28 = vmax.f32 %v164_v25, 0.0  ;;  %v216_v29 = vpop.f32.mrb[3].mxu1 }
 0x1bf   :  { %v170_v32 = vmul.f32 %v169_v28, %v55_v30 }
 0x1c1   :  { %v171_v33 = vrot.slane %v170_v32, 4 }
 0x1c3   :  { %v172_v35 = vadd.f32 %v171_v33, %v170_v32 }
 0x1c5   :  { %v173_v36 = vrot.slane %v172_v35, 2 }
 0x1c7   :  { %v174_v38 = vadd.f32 %v173_v36, %v172_v35 }
 0x1c9   :  { %v175_v40 = vrot.slane %v174_v38, 1 }
 0x1cb   :  { %v176_v42 = vadd.f32 %v175_v40, %v174_v38 }
 0x1cd   :  { %v177_v43 = vadd.f32 %v176_v42, %v66_v41 }
 0x1cf   :  { %v178_v44 = vsub.f32 0.0, %v177_v43 }
 0x1d1   :  { %v179_v45 = vmul.f32 1.442695, %v178_v44 }
 0x1d3   :  { %224 = vpow2.f32 %v179_v45 }
 0x1dd   :  { %v225_v46 = vpop.eup %224 }
 0x1de   :  { %v181_v47 = vadd.f32 1.0, %v225_v46 }
 0x1e0   :  { %226 = vrcp.f32 %v181_v47 }
 0x1ea   :  { %v227_v48 = vpop.eup %226 }
 0x1eb   :  { %183 = vst [vmem:[#allocation3] sm:$0x1] %v227_v48 }
 0x1ec   :  { %239 = shalt.err (!%p236_p4)
}
 0x1ed   :  { %s240_s16 = scalar_lea.hbm %s339_s7, 16 }
 0x1ee   :  { %p241_p5 = scmp.ne.s32.totalorder %s339_s7, %s240_s16  ;;  %p244_p6 = scmp.lt.u32.totalorder %s240_s16, %s339_s7 }
 0x1f0   :  { %p246_p7 = pnand %p244_p6, %p241_p5 }
 0x1f2   :  { %249 = shalt.err (!%p246_p7)
}
 0x1f3   :  { %193 = dma.vmem_to_hbm [thread:$0]  %s191_s5, 16, %s339_s7, [#allocation4]  }
 0x1f4   :  { %250 = dma.done.wait [#allocation4], 16  }
 0x1f5   :  { %251 = vsyncadd [#allocation4], 4294967280 }
 0x1f6   :  { %197 = vsyncpa [#allocation4], 1 }

</bundles_post_ra>
